<compile_context>
chip_gen: v7x
topology: tpu7x:2x2x1
jax: 0.10.0
libtpu: 0.0.40
codegen_flags: <defaults>
</compile_context>

<pallas_src>
import functools

import jax
import jax.numpy as jnp
import numpy as np
from jax.experimental import pallas as pl
from jax.experimental.pallas import tpu as pltpu


def _round_up(x, m):
    return ((x + m - 1) // m) * m


def _psf_loss_kernel(psf_ref, cmask_ref, pred_ref, tgt_ref, part_ref,
                     tpad_ref, *, C, H, W, K, PADF):
    """One grid step = one batch image.

    psf_ref   : (K*K, C, C) f32 VMEM   per-tap (C_out, C_in) matrices, t = kh*K + kw
    cmask_ref : (K, 1, H*W) f32 VMEM   0/1 column-validity mask per horizontal offset
    pred_ref  : (1, C, H*W)            model output image (lane-dense flat spatial)
    tgt_ref   : (1, C, H*W)            target image
    part_ref  : (1, 1, H*W) f32        per-image, per-lane partial sums of sq. error
    tpad_ref  : (C, H*W + 2*PADF) f32  flat zero-padded target scratch (PADF % 128 == 0)
    """
    pad = K // 2
    HW = H * W

    tgt = tgt_ref[0].astype(jnp.float32)       # (C, HW)
    pred = pred_ref[0].astype(jnp.float32)     # (C, HW)

    # Margin-only zeroing (lane-aligned); the interior is fully overwritten
    # every step, so only the two PADF-wide margins need zeros.
    margin = jnp.zeros((C, PADF), jnp.float32)
    tpad_ref[:, 0:PADF] = margin
    tpad_ref[:, PADF + HW:PADF + HW + PADF] = margin
    # Lane-aligned (PADF % 128 == 0) unmasked bulk copy of the target.
    tpad_ref[:, PADF:PADF + HW] = tgt

    # Blur via per-tap MXU matmuls, accumulated in registers (no im2col scratch).
    # Default f32 MXU precision accepted deliberately (see header note).
    acc = jnp.zeros((C, HW), jnp.float32)
    for kw in range(K):
        sub = jnp.zeros((C, HW), jnp.float32)
        for kh in range(K):
            t = kh * K + kw
            off = PADF + (kh - pad) * W + (kw - pad)       # static flat offset
            win = tpad_ref[:, off:off + HW]                # (C, HW) static slice
            sub = sub + jnp.dot(psf_ref[t], win,
                                preferred_element_type=jnp.float32)
        if kw != pad:
            # zero positions whose column index wraps across image rows;
            # the mask depends only on kw, so apply once per kw after the kh sum.
            sub = sub * cmask_ref[kw]                      # (1, HW) broadcast over C
        acc = acc + sub

    # Squared error -> per-lane partials (channel-summed), lane-dense store.
    d = pred - acc
    part_ref[0] = jnp.sum(d * d, axis=0, keepdims=True)   # (1, HW)


def psf_loss(output, target, psf_kernel, weight=1.0):
    """Pallas equivalent of PSFLoss.forward(output, target)."""
    N, C, H, W = output.shape
    Co, Ci, K, K2 = psf_kernel.shape
    assert Co == C and Ci == C and K == K2, "psf_kernel must be (C, C, k, k)"
    assert K % 2 == 1, "odd PSF kernel expected (padding = K // 2)"
    pad = K // 2
    HW = H * W
    # Lane-aligned padded-scratch margin (>= pad*(W+1), multiple of 128).
    PADF = _round_up(pad * (W + 1), 128)

    # Free (metadata-only) reshapes to the lane-dense (N, C, H*W) layout.
    pred_flat = output.reshape(N, C, HW)
    tgt_flat = target.reshape(N, C, HW)

    # Per-tap (C_out, C_in) matrices, ordered t = kh*K + kw.
    psf_taps = jnp.transpose(psf_kernel, (2, 3, 0, 1)).reshape(K * K, C, C)
    psf_taps = psf_taps.astype(jnp.float32)

    # 0/1 column-validity masks (host-computed constants): for horizontal
    # offset dx = kw - pad, flat position p (= h*W + w) is valid iff 0 <= w+dx < W.
    col = np.arange(HW) % W
    cmask_np = np.zeros((K, 1, HW), np.float32)
    for kw in range(K):
        dx = kw - pad
        cmask_np[kw, 0, :] = ((col + dx >= 0) & (col + dx < W)).astype(np.float32)
    cmask = jnp.asarray(cmask_np)

    kernel = functools.partial(_psf_loss_kernel, C=C, H=H, W=W, K=K, PADF=PADF)

    partials = pl.pallas_call(
        kernel,
        out_shape=jax.ShapeDtypeStruct((N, 1, HW), jnp.float32),
        grid=(N,),
        in_specs=[
            pl.BlockSpec((K * K, C, C), lambda n: (0, 0, 0)),      # psf taps (VMEM)
            pl.BlockSpec((K, 1, HW), lambda n: (0, 0, 0)),         # column masks
            pl.BlockSpec((1, C, HW), lambda n: (n, 0, 0)),         # output image
            pl.BlockSpec((1, C, HW), lambda n: (n, 0, 0)),         # target image
        ],
        out_specs=pl.BlockSpec((1, 1, HW), lambda n: (n, 0, 0)),   # per-image partials
        scratch_shapes=[
            pltpu.VMEM((C, HW + 2 * PADF), jnp.float32),           # padded flat target
        ],
        compiler_params=pltpu.CompilerParams(
            dimension_semantics=("parallel",),     # independent per-image partials
            vmem_limit_bytes=48 * 1024 * 1024,     # safe on v7x, headroom on v5e/v6e
        ),
    )(psf_taps, cmask, pred_flat, tgt_flat)

    # Final (tiny) reduction + weight/mean in plain JAX.
    sse = jnp.sum(partials)
    return (weight / float(N * C * H * W)) * sse


if __name__ == "__main__":
    key = jax.random.PRNGKey(0)
    k1, k2, k3 = jax.random.split(key, 3)

    N, C, H, W, K = 2, 4, 16, 16, 3
    weight = 0.7

    output = jax.random.normal(k1, (N, C, H, W), dtype=jnp.float32)
    target = jax.random.normal(k2, (N, C, H, W), dtype=jnp.float32)
    # deterministic synthetic PSF weights, shape (C_out, C_in, kH, kW)
    psf = 0.1 * jax.random.normal(k3, (C, C, K, K), dtype=jnp.float32)

    loss = psf_loss(output, target, psf, weight=weight)
    loss = jax.block_until_ready(loss)

    # pure-JAX reference (matches F.conv2d + F.mse_loss semantics)
    blurred = jax.lax.conv_general_dilated(
        target, psf, window_strides=(1, 1),
        padding=[(K // 2, K // 2), (K // 2, K // 2)],
        dimension_numbers=("NCHW", "OIHW", "NCHW"),
        precision=jax.lax.Precision.HIGHEST,
    )
    ref = weight * jnp.mean((output - blurred) ** 2)
    np.testing.assert_allclose(np.asarray(loss), np.asarray(ref),
                               rtol=2e-3, atol=1e-5)

    print("KERNEL_OK")
</pallas_src>

<mosaic_0001>
module attributes {stable_mosaic.version = 11 : i64} {
  func.func @_psf_loss_kernel(%arg0: i32, %arg1: memref<9x4x4xf32, #tpu.memory_space<vmem>>, %arg2: memref<3x1x256xf32, #tpu.memory_space<vmem>>, %arg3: memref<1x4x256xf32, #tpu.memory_space<vmem>>, %arg4: memref<1x4x256xf32, #tpu.memory_space<vmem>>, %arg5: memref<1x1x256xf32, #tpu.memory_space<vmem>>, %arg6: memref<4x512xf32, #tpu.memory_space<vmem>>) attributes {dimension_semantics = [#tpu.dimension_semantics<parallel>], iteration_bounds = array<i64: 2>, scalar_prefetch = 0 : i64, scratch_operands = 1 : i64, tpu.core_type = #tpu.core_type<tc>, window_params = [{pipeline_mode = #tpu.pipeline_mode<synchronous>, transform_indices = @transform_0, window_bounds = array<i64: 9, 4, 4>}, {pipeline_mode = #tpu.pipeline_mode<synchronous>, transform_indices = @transform_1, window_bounds = array<i64: 3, 1, 256>}, {transform_indices = @transform_2, window_bounds = array<i64: 1, 4, 256>}, {transform_indices = @transform_3, window_bounds = array<i64: 1, 4, 256>}, {transform_indices = @transform_4, window_bounds = array<i64: 1, 1, 256>}]} {
    %c0 = arith.constant 0 : index
    %c0_0 = arith.constant 0 : index
    %c0_1 = arith.constant 0 : index
    %0 = vector.load %arg4[%c0, %c0_0, %c0_1] : memref<1x4x256xf32, #tpu.memory_space<vmem>>, vector<1x4x256xf32>
    %1 = vector.shape_cast %0 : vector<1x4x256xf32> to vector<4x256xf32>
    %c0_2 = arith.constant 0 : index
    %c0_3 = arith.constant 0 : index
    %c0_4 = arith.constant 0 : index
    %2 = vector.load %arg3[%c0_2, %c0_3, %c0_4] : memref<1x4x256xf32, #tpu.memory_space<vmem>>, vector<1x4x256xf32>
    %3 = vector.shape_cast %2 : vector<1x4x256xf32> to vector<4x256xf32>
    %cst = arith.constant 0.000000e+00 : f32
    %4 = vector.broadcast %cst : f32 to vector<4x128xf32>
    %c0_5 = arith.constant 0 : index
    %c0_6 = arith.constant 0 : index
    %5 = vector.load %arg6[%c0_5, %c0_6] : memref<4x512xf32, #tpu.memory_space<vmem>>, vector<4x128xf32>
    tpu.vector_store %arg6[%c0_5, %c0_6], %4 {strides = array<i32>} : memref<4x512xf32, #tpu.memory_space<vmem>>, vector<4x128xf32>,
    %c0_7 = arith.constant 0 : index
    %c384 = arith.constant 384 : index
    %6 = vector.load %arg6[%c0_7, %c384] : memref<4x512xf32, #tpu.memory_space<vmem>>, vector<4x128xf32>
    tpu.vector_store %arg6[%c0_7, %c384], %4 {strides = array<i32>} : memref<4x512xf32, #tpu.memory_space<vmem>>, vector<4x128xf32>,
    %c0_8 = arith.constant 0 : index
    %c128 = arith.constant 128 : index
    %7 = vector.load %arg6[%c0_8, %c128] : memref<4x512xf32, #tpu.memory_space<vmem>>, vector<4x256xf32>
    tpu.vector_store %arg6[%c0_8, %c128], %1 {strides = array<i32>} : memref<4x512xf32, #tpu.memory_space<vmem>>, vector<4x256xf32>,
    %cst_9 = arith.constant 0.000000e+00 : f32
    %8 = vector.broadcast %cst_9 : f32 to vector<4x256xf32>
    %cst_10 = arith.constant 0.000000e+00 : f32
    %9 = vector.broadcast %cst_10 : f32 to vector<4x256xf32>
    %c0_11 = arith.constant 0 : index
    %c111 = arith.constant 111 : index
    %10 = vector.load %arg6[%c0_11, %c111] : memref<4x512xf32, #tpu.memory_space<vmem>>, vector<4x256xf32>
    %c0_12 = arith.constant 0 : index
    %c0_13 = arith.constant 0 : index
    %c0_14 = arith.constant 0 : index
    %11 = vector.load %arg1[%c0_12, %c0_13, %c0_14] : memref<9x4x4xf32, #tpu.memory_space<vmem>>, vector<1x4x4xf32>
    %12 = vector.shape_cast %11 : vector<1x4x4xf32> to vector<4x4xf32>
    %cst_15 = arith.constant dense<0.000000e+00> : vector<4x256xf32>
    %13 = tpu.matmul %12, %10, %cst_15 {dimension_numbers = #tpu.dot_dimension_numbers<[1], [0], [0], [1], [0, 0, 1, 1], [], []>} : vector<4x4xf32>, vector<4x256xf32>, vector<4x256xf32> -> vector<4x256xf32>
    %14 = arith.addf %9, %13 : vector<4x256xf32>
    %c0_16 = arith.constant 0 : index
    %c127 = arith.constant 127 : index
    %15 = vector.load %arg6[%c0_16, %c127] : memref<4x512xf32, #tpu.memory_space<vmem>>, vector<4x256xf32>
    %c3 = arith.constant 3 : index
    %c0_17 = arith.constant 0 : index
    %c0_18 = arith.constant 0 : index
    %16 = vector.load %arg1[%c3, %c0_17, %c0_18] : memref<9x4x4xf32, #tpu.memory_space<vmem>>, vector<1x4x4xf32>
    %17 = vector.shape_cast %16 : vector<1x4x4xf32> to vector<4x4xf32>
    %cst_19 = arith.constant dense<0.000000e+00> : vector<4x256xf32>
    %18 = tpu.matmul %17, %15, %cst_19 {dimension_numbers = #tpu.dot_dimension_numbers<[1], [0], [0], [1], [0, 0, 1, 1], [], []>} : vector<4x4xf32>, vector<4x256xf32>, vector<4x256xf32> -> vector<4x256xf32>
    %19 = arith.addf %14, %18 : vector<4x256xf32>
    %c0_20 = arith.constant 0 : index
    %c143 = arith.constant 143 : index
    %20 = vector.load %arg6[%c0_20, %c143] : memref<4x512xf32, #tpu.memory_space<vmem>>, vector<4x256xf32>
    %c6 = arith.constant 6 : index
    %c0_21 = arith.constant 0 : index
    %c0_22 = arith.constant 0 : index
    %21 = vector.load %arg1[%c6, %c0_21, %c0_22] : memref<9x4x4xf32, #tpu.memory_space<vmem>>, vector<1x4x4xf32>
    %22 = vector.shape_cast %21 : vector<1x4x4xf32> to vector<4x4xf32>
    %cst_23 = arith.constant dense<0.000000e+00> : vector<4x256xf32>
    %23 = tpu.matmul %22, %20, %cst_23 {dimension_numbers = #tpu.dot_dimension_numbers<[1], [0], [0], [1], [0, 0, 1, 1], [], []>} : vector<4x4xf32>, vector<4x256xf32>, vector<4x256xf32> -> vector<4x256xf32>
    %24 = arith.addf %19, %23 : vector<4x256xf32>
    %c0_24 = arith.constant 0 : index
    %c0_25 = arith.constant 0 : index
    %c0_26 = arith.constant 0 : index
    %25 = vector.load %arg2[%c0_24, %c0_25, %c0_26] : memref<3x1x256xf32, #tpu.memory_space<vmem>>, vector<1x1x256xf32>
    %26 = vector.shape_cast %25 : vector<1x1x256xf32> to vector<1x256xf32>
    %27 = vector.broadcast %26 : vector<1x256xf32> to vector<4x256xf32>
    %28 = arith.mulf %24, %27 : vector<4x256xf32>
    %29 = arith.addf %8, %28 : vector<4x256xf32>
    %cst_27 = arith.constant 0.000000e+00 : f32
    %30 = vector.broadcast %cst_27 : f32 to vector<4x256xf32>
    %c0_28 = arith.constant 0 : index
    %c112 = arith.constant 112 : index
    %31 = vector.load %arg6[%c0_28, %c112] : memref<4x512xf32, #tpu.memory_space<vmem>>, vector<4x256xf32>
    %c1 = arith.constant 1 : index
    %c0_29 = arith.constant 0 : index
    %c0_30 = arith.constant 0 : index
    %32 = vector.load %arg1[%c1, %c0_29, %c0_30] : memref<9x4x4xf32, #tpu.memory_space<vmem>>, vector<1x4x4xf32>
    %33 = vector.shape_cast %32 : vector<1x4x4xf32> to vector<4x4xf32>
    %cst_31 = arith.constant dense<0.000000e+00> : vector<4x256xf32>
    %34 = tpu.matmul %33, %31, %cst_31 {dimension_numbers = #tpu.dot_dimension_numbers<[1], [0], [0], [1], [0, 0, 1, 1], [], []>} : vector<4x4xf32>, vector<4x256xf32>, vector<4x256xf32> -> vector<4x256xf32>
    %35 = arith.addf %30, %34 : vector<4x256xf32>
    %c0_32 = arith.constant 0 : index
    %c128_33 = arith.constant 128 : index
    %36 = vector.load %arg6[%c0_32, %c128_33] : memref<4x512xf32, #tpu.memory_space<vmem>>, vector<4x256xf32>
    %c4 = arith.constant 4 : index
    %c0_34 = arith.constant 0 : index
    %c0_35 = arith.constant 0 : index
    %37 = vector.load %arg1[%c4, %c0_34, %c0_35] : memref<9x4x4xf32, #tpu.memory_space<vmem>>, vector<1x4x4xf32>
    %38 = vector.shape_cast %37 : vector<1x4x4xf32> to vector<4x4xf32>
    %cst_36 = arith.constant dense<0.000000e+00> : vector<4x256xf32>
    %39 = tpu.matmul %38, %36, %cst_36 {dimension_numbers = #tpu.dot_dimension_numbers<[1], [0], [0], [1], [0, 0, 1, 1], [], []>} : vector<4x4xf32>, vector<4x256xf32>, vector<4x256xf32> -> vector<4x256xf32>
    %40 = arith.addf %35, %39 : vector<4x256xf32>
    %c0_37 = arith.constant 0 : index
    %c144 = arith.constant 144 : index
    %41 = vector.load %arg6[%c0_37, %c144] : memref<4x512xf32, #tpu.memory_space<vmem>>, vector<4x256xf32>
    %c7 = arith.constant 7 : index
    %c0_38 = arith.constant 0 : index
    %c0_39 = arith.constant 0 : index
    %42 = vector.load %arg1[%c7, %c0_38, %c0_39] : memref<9x4x4xf32, #tpu.memory_space<vmem>>, vector<1x4x4xf32>
    %43 = vector.shape_cast %42 : vector<1x4x4xf32> to vector<4x4xf32>
    %cst_40 = arith.constant dense<0.000000e+00> : vector<4x256xf32>
    %44 = tpu.matmul %43, %41, %cst_40 {dimension_numbers = #tpu.dot_dimension_numbers<[1], [0], [0], [1], [0, 0, 1, 1], [], []>} : vector<4x4xf32>, vector<4x256xf32>, vector<4x256xf32> -> vector<4x256xf32>
    %45 = arith.addf %40, %44 : vector<4x256xf32>
    %46 = arith.addf %29, %45 : vector<4x256xf32>
    %cst_41 = arith.constant 0.000000e+00 : f32
    %47 = vector.broadcast %cst_41 : f32 to vector<4x256xf32>
    %c0_42 = arith.constant 0 : index
    %c113 = arith.constant 113 : index
    %48 = vector.load %arg6[%c0_42, %c113] : memref<4x512xf32, #tpu.memory_space<vmem>>, vector<4x256xf32>
    %c2 = arith.constant 2 : index
    %c0_43 = arith.constant 0 : index
    %c0_44 = arith.constant 0 : index
    %49 = vector.load %arg1[%c2, %c0_43, %c0_44] : memref<9x4x4xf32, #tpu.memory_space<vmem>>, vector<1x4x4xf32>
    %50 = vector.shape_cast %49 : vector<1x4x4xf32> to vector<4x4xf32>
    %cst_45 = arith.constant dense<0.000000e+00> : vector<4x256xf32>
    %51 = tpu.matmul %50, %48, %cst_45 {dimension_numbers = #tpu.dot_dimension_numbers<[1], [0], [0], [1], [0, 0, 1, 1], [], []>} : vector<4x4xf32>, vector<4x256xf32>, vector<4x256xf32> -> vector<4x256xf32>
    %52 = arith.addf %47, %51 : vector<4x256xf32>
    %c0_46 = arith.constant 0 : index
    %c129 = arith.constant 129 : index
    %53 = vector.load %arg6[%c0_46, %c129] : memref<4x512xf32, #tpu.memory_space<vmem>>, vector<4x256xf32>
    %c5 = arith.constant 5 : index
    %c0_47 = arith.constant 0 : index
    %c0_48 = arith.constant 0 : index
    %54 = vector.load %arg1[%c5, %c0_47, %c0_48] : memref<9x4x4xf32, #tpu.memory_space<vmem>>, vector<1x4x4xf32>
    %55 = vector.shape_cast %54 : vector<1x4x4xf32> to vector<4x4xf32>
    %cst_49 = arith.constant dense<0.000000e+00> : vector<4x256xf32>
    %56 = tpu.matmul %55, %53, %cst_49 {dimension_numbers = #tpu.dot_dimension_numbers<[1], [0], [0], [1], [0, 0, 1, 1], [], []>} : vector<4x4xf32>, vector<4x256xf32>, vector<4x256xf32> -> vector<4x256xf32>
    %57 = arith.addf %52, %56 : vector<4x256xf32>
    %c0_50 = arith.constant 0 : index
    %c145 = arith.constant 145 : index
    %58 = vector.load %arg6[%c0_50, %c145] : memref<4x512xf32, #tpu.memory_space<vmem>>, vector<4x256xf32>
    %c8 = arith.constant 8 : index
    %c0_51 = arith.constant 0 : index
    %c0_52 = arith.constant 0 : index
    %59 = vector.load %arg1[%c8, %c0_51, %c0_52] : memref<9x4x4xf32, #tpu.memory_space<vmem>>, vector<1x4x4xf32>
    %60 = vector.shape_cast %59 : vector<1x4x4xf32> to vector<4x4xf32>
    %cst_53 = arith.constant dense<0.000000e+00> : vector<4x256xf32>
    %61 = tpu.matmul %60, %58, %cst_53 {dimension_numbers = #tpu.dot_dimension_numbers<[1], [0], [0], [1], [0, 0, 1, 1], [], []>} : vector<4x4xf32>, vector<4x256xf32>, vector<4x256xf32> -> vector<4x256xf32>
    %62 = arith.addf %57, %61 : vector<4x256xf32>
    %c2_54 = arith.constant 2 : index
    %c0_55 = arith.constant 0 : index
    %c0_56 = arith.constant 0 : index
    %63 = vector.load %arg2[%c2_54, %c0_55, %c0_56] : memref<3x1x256xf32, #tpu.memory_space<vmem>>, vector<1x1x256xf32>
    %64 = vector.shape_cast %63 : vector<1x1x256xf32> to vector<1x256xf32>
    %65 = vector.broadcast %64 : vector<1x256xf32> to vector<4x256xf32>
    %66 = arith.mulf %62, %65 : vector<4x256xf32>
    %67 = arith.addf %46, %66 : vector<4x256xf32>
    %68 = arith.subf %3, %67 : vector<4x256xf32>
    %69 = arith.mulf %68, %68 : vector<4x256xf32>
    %cst_57 = arith.constant dense<0.000000e+00> : vector<256xf32>
    %70 = vector.multi_reduction <add>, %69, %cst_57 [0] : vector<4x256xf32> to vector<256xf32>
    %71 = vector.shape_cast %70 : vector<256xf32> to vector<1x256xf32>
    %c0_58 = arith.constant 0 : index
    %c0_59 = arith.constant 0 : index
    %c0_60 = arith.constant 0 : index
    %72 = vector.load %arg5[%c0_58, %c0_59, %c0_60] : memref<1x1x256xf32, #tpu.memory_space<vmem>>, vector<1x1x256xf32>
    %73 = vector.shape_cast %72 : vector<1x1x256xf32> to vector<1x256xf32>
    %74 = vector.shape_cast %71 : vector<1x256xf32> to vector<1x1x256xf32>
    tpu.vector_store %arg5[%c0_58, %c0_59, %c0_60], %74 {strides = array<i32>} : memref<1x1x256xf32, #tpu.memory_space<vmem>>, vector<1x1x256xf32>,
    return
  }
  func.func @transform_0(%arg0: i32) -> (i32, i32, i32) {
    %c0_i32 = arith.constant 0 : i32
    %c0_i32_0 = arith.constant 0 : i32
    %c0_i32_1 = arith.constant 0 : i32
    %c0_i32_2 = arith.constant 0 : i32
    return %c0_i32, %c0_i32_0, %c0_i32_1 : i32, i32, i32
  }
  func.func @transform_1(%arg0: i32) -> (i32, i32, i32) {
    %c0_i32 = arith.constant 0 : i32
    %c0_i32_0 = arith.constant 0 : i32
    %c0_i32_1 = arith.constant 0 : i32
    %c0_i32_2 = arith.constant 0 : i32
    return %c0_i32, %c0_i32_0, %c0_i32_1 : i32, i32, i32
  }
  func.func @transform_2(%arg0: i32) -> (i32, i32, i32) {
    %c0_i32 = arith.constant 0 : i32
    %c0_i32_0 = arith.constant 0 : i32
    %c0_i32_1 = arith.constant 0 : i32
    return %arg0, %c0_i32, %c0_i32_0 : i32, i32, i32
  }
  func.func @transform_3(%arg0: i32) -> (i32, i32, i32) {
    %c0_i32 = arith.constant 0 : i32
    %c0_i32_0 = arith.constant 0 : i32
    %c0_i32_1 = arith.constant 0 : i32
    return %arg0, %c0_i32, %c0_i32_0 : i32, i32, i32
  }
  func.func @transform_4(%arg0: i32) -> (i32, i32, i32) {
    %c0_i32 = arith.constant 0 : i32
    %c0_i32_0 = arith.constant 0 : i32
    %c0_i32_1 = arith.constant 0 : i32
    return %arg0, %c0_i32, %c0_i32_0 : i32, i32, i32
  }
}

</mosaic_0001>

<bundles_post_ra>
// kernel: tpu_custom_call.1
= control target key start
LH: loop header
LB: loop body
LE: loop exit
PB: predicated region body
PF: predicated region fallthrough
CT: control target
= control target key end

     0   :  { %9 = vsyncpa [#allocation4], 0  ;;  %s1634_s0 = inlined_call_operand.vmem [shape: f32[9,4,4], index: 0, kind: input, shape index: {}]   ;;  %s1635_s1 = inlined_call_operand.vmem [shape: f32[3,1,256], index: 1, kind: input, shape index: {}]   ;;  %s1636_s2 = inlined_call_operand.vmem [shape: f32[2,4,256], index: 2, kind: input, shape index: {}]   ;;  %s1637_s3 = inlined_call_operand.vmem [shape: f32[2,4,256], index: 3, kind: input, shape index: {}]   ;;  %s1638_s4 = inlined_call_operand.hbm [shape: f32[2,1,256], index: 4, kind: output, shape index: {}]  }
   0x1   :  { %11 = vsyncpa [#allocation4 + $0x1], 0  ;;  %s1441_s15 = smov 0   ;;  %s1443_s16 = smov 0  }
   0x2   :  { %s1445_s17 = smov 0   ;;  %s1447_s18 = smov 0  }
   0x3 LB: > { %s1462_s19 = sadd.s32 4294967295, %s1403_s18   ;;  %s1225_s20 = sadd.s32 4294967294, %s1403_s18   ;;  %s1403_s18 = sphi %s1447_s18, %s1644_s18   ;;  %s1399_s17 = sphi %s1445_s17, %s1643_s17   ;;  %s1395_s16 = sphi %s1443_s16, %s1642_s16   ;;  %s1391_s15 = sphi %s1441_s15, %s1641_s15  }
   0x4   : > { %s1466_s21 = sadd.s32 1, %s1403_s18   ;;  %s118_s22 = sadd.s32 1, %s1399_s17 }
   0x5   : > { %s115_s23 = ssub.s32 %s1403_s18, %s1466_s21  ;;  %p128_p0 = scmp.ne.s32.totalorder %s1399_s17, %s1395_s16 }
   0x6   : > { %p116_p1 = scmp.eq.s32.totalorder %s115_s23, 0  ;;  %p129_p2 = scmp.eq.s32.totalorder %s1462_s19, 1 }
   0x7   : > { %p134_p3 = scmp.ne.s32.totalorder %s1395_s16, %s1391_s15  ;;  %p135_p4 = scmp.eq.s32.totalorder %s1225_s20, 1 }
   0x8   : > { %s1477_s24 = scalar_select %p116_p1, %s1399_s17, %s118_s22  }
   0x9   : > { %p1479_p5 = por %p129_p2, %p128_p0  ;;  %p1483_p6 = por %p135_p4, %p134_p3 }
   0xa   : > { %p1228_p7 = scmp.ge.s32.totalorder %s1403_s18, 1  ;;  %p175_p8 = scmp.lt.s32.totalorder %s1403_s18, 3 }
   0xc   : > { %p176_p9 = pnand %p1228_p7, %p175_p8 }
   0xd   : > { %p206_p10 = scmp.lt.s32.totalorder (!%p176_p9), %s1462_s19, 1  ;;  %v1405_v0 = vmov (!%p176_p9), 0.0   ;;  %s1406_s6 = smov (!%p176_p9), 113   ;;  %vm235_vm0 = vcmask (!%p176_p9), 7168   ;;  %vm324_vm1 = vcmask (!%p176_p9), 138240   ;;  %vm242_vm2 = vcmask (!%p176_p9), 1043456  }
   0xe   : > { %179 = sbr.rel (%p176_p9) target bundleno = 453 (0x1c5), region = 36  ;;  %219 = vst [vmem:[#allocation2 + $0xc] sm:$0xf] (!%p176_p9), %v1405_v0  ;;  %218 = vst [vmem:[#allocation2] sm:$0xf] (!%p176_p9), %v1405_v0  ;;  %398 = vmatprep.mubr.f32.mxu0 (!%p176_p9), %v1405_v0  ;;  %311 = vmatprep.mubr.f32.mxu1 (!%p176_p9), %v1405_v0  ;;  %s1407_s7 = smov (!%p176_p9), 17  }
   0xf   : > { %s1408_s8 = smov (!%p176_p9), 1   ;;  %s1409_s9 = smov (!%p176_p9), 127   ;;  %vm238_vm3 = vcmask (!%p176_p9), 31744   ;;  %v223_v23 = vld [vmem:[%s1634_s0] sm:$0xf] (!%p176_p9)  ;;  %vm418_vm4 = vcmask (!%p176_p9), 924672  }
  0x10   : > { %s1410_s10 = smov (!%p176_p9), 16   ;;  %s1411_s11 = smov (!%p176_p9), 15   ;;  %v1234_v24 = vld [vmem:[%s1634_s0 + $0xc] sm:$0xf] (!%p176_p9)  ;;  %v1246_v29 = vld [vmem:[%s1634_s0 + $0x10] sm:$0xf] (!%p176_p9) }
  0x11   : > { %s1412_s12 = smov (!%p176_p9), 112   ;;  %s1413_s13 = smov (!%p176_p9), 111   ;;  %vm809_vm5 = vcmask (!%p176_p9), 1039360   ;;  %v1241_v33 = vld [vmem:[%s1634_s0 + $0x18] sm:$0xf] (!%p176_p9)  ;;  %vm613_vm6 = vcmask (!%p176_p9), 130048  }
  0x12   : > { %v1258_v37 = vld [vmem:[%s1634_s0 + $0x14] sm:$0xf] (!%p176_p9)  ;;  %vm899_vm7 = vcmask (!%p176_p9), 121856   ;;  %v1245_v43 = vld [vmem:[%s1634_s0 + $0x4] sm:$0xf] (!%p176_p9)  ;;  %vm707_vm8 = vcmask (!%p176_p9), 916480  }
  0x13   : > { %v1257_v48 = vld [vmem:[%s1634_s0 + $0x8] sm:$0xf] (!%p176_p9)  ;;  %vm993_vm9 = vcmask (!%p176_p9), 908288   ;;  %v1253_v55 = vld [vmem:[%s1634_s0 + $0x1c] sm:$0xf] (!%p176_p9) }
  0x14   : > { %v1265_v59 = vld [vmem:[%s1634_s0 + $0x20] sm:$0xf] (!%p176_p9) }
  0x15   : > { %s1495_s27 = scalar_select %p206_p10, %s1462_s19, 1  ;;  %v406_v2 = vld [vmem:[#allocation2 + $0xc] sm:$0xf] }
  0x16   : > { %416 = vrot.lane.b32.xlu0 %v406_v2, %s1406_s6  ;;  %v797_v7 = vld [vmem:[#allocation2 + $0xc] sm:$0xf] }
  0x17   : > { %s1275_s28 = sshll.u32 %s1495_s27, 3  ;;  %v695_v10 = vld [vmem:[#allocation2 + $0xc] sm:$0xf]  ;;  %s203_s27 = sand.u32 1, %s1395_s16  }
  0x18   : > { %s215_s5 = scalar_lea.vmem %s1637_s3, %s1275_s28  ;;  %v981_v11 = vld [vmem:[#allocation2 + $0xc] sm:$0xf]  ;;  %s1140_s20 = scalar_lea.sflag [#allocation4], %s203_s27 }
  0x19   : > { %v1503_v1 = vld [vmem:[%s215_s5] sm:$0xff] }
  0x1a   : > { %220 = vst [vmem:[#allocation2 + $0x4] sm:$0xff] %v1503_v1  ;;  %v411_v6 = vcombine.high %v1503_v1, %v1503_v1 }
  0x21   : > { %v222_v3 = vld [vmem:[#allocation2 + $0x8] sm:$0xf]  ;;  %v221_v4 = vld [vmem:[#allocation2] sm:$0xff] }
  0x22   : > { %322 = vrot.lane.b32.xlu0 %v222_v3, %s1407_s7  ;;  %318 = vrot.lane.b32.xlu1 %v221_v4, %s1407_s7  ;;  %v228_v5 = vcombine.high %v221_v4, %v221_v4  ;;  %v518_v8 = vld [vmem:[#allocation2 + $0x8] sm:$0xf] }
  0x23   : > { %v793_v9 = vld [vmem:[#allocation2 + $0x8] sm:$0xf] }
  0x26   : > { %233 = vrot.lane.b32.xlu0 %v222_v3, %s1408_s8  ;;  %229 = vrot.lane.b32.xlu1 %v221_v4, %s1408_s8  ;;  %v503_v3 = vlaneseq }
  0x28   : > { %vm1136_vm10 = vcmp.lt.s32.totalorder %v503_v3, 256 }
  0x2a   : > { %231 = vrot.lane.b32.xlu1 %v228_v5, %s1408_s8  ;;  %320 = vrot.lane.b32.xlu0 %v228_v5, %s1407_s7  ;;  %s210_s8 = scalar_lea.vmem %s1636_s2, %s1275_s28  ;;  %s1229_s28 = sshll.u32 %s203_s27, 1 }
  0x2e   : > { %414 = vrot.lane.b32.xlu1 %v411_v6, %s1406_s6  ;;  %412 = vrot.lane.b32.xlu0 %v1503_v1, %s1406_s6 }
  0x32   : > { %805 = vrot.lane.b32.xlu1 %v411_v6, %s1409_s9  ;;  %807 = vrot.lane.b32.xlu0 %v797_v7, %s1409_s9 }
  0x36   : > { %803 = vrot.lane.b32.xlu1 %v1503_v1, %s1409_s9  ;;  %609 = vrot.lane.b32.xlu0 %v228_v5, %s1410_s10  ;;  %s1277_s9 = sshll.u32 %s1462_s19, 5  ;;  %s1415_s19 = smov [#allocation3]  }
  0x37   : > { %s1592_s14 = scalar_lea.hbm %s1638_s4, %s1277_s9  ;;  %s1345_s23 = sshll.u32 %s1415_s19, 4  ;;  %s1346_s23 = int_to_ptr.vmem [resolvable:$false] %s1345_s23 }
  0x38   : > { %s1347_s29 = scalar_lea.vmem %s1346_s23, 64 }
  0x3a   : > { %611 = vrot.lane.b32.xlu1 %v518_v8, %s1410_s10  ;;  %895 = vrot.lane.b32.xlu0 %v228_v5, %s1411_s11 }
  0x3e   : > { %897 = vrot.lane.b32.xlu1 %v793_v9, %s1411_s11  ;;  %607 = vrot.lane.b32.xlu0 %v221_v4, %s1410_s10  ;;  %s205_s10 = scalar_lea.vmem [#allocation3], %s1229_s28 }
  0x42   : > { %893 = vrot.lane.b32.xlu1 %v221_v4, %s1411_s11  ;;  %703 = vrot.lane.b32.xlu0 %v411_v6, %s1412_s12  ;;  %v504_v4 = vshrl.u32 %v503_v3, 7  ;;  %s1154_s11 = sshll.u32 %s205_s10, 4  ;;  %s1594_s11 = int_to_ptr.vmem [resolvable:$true] %s1154_s11 }
  0x43   : > { %s1341_s22 = scalar_lea.vmem %s1594_s11, 32  ;;  %p1348_p0 = scmp.lt.s32.totalorder %s1594_s11, %s1346_s23 }
  0x44   : > { %v505_v5 = vsub.s32 0, %v504_v4  ;;  %v509_v7 = vsub.s32 1, %v504_v4  ;;  %p1342_p11 = scmp.ne.s32.totalorder %s1594_s11, %s1341_s22  ;;  %p1349_p1 = scmp.lt.s32.totalorder %s1347_s29, %s1341_s22 }
  0x46   : > { %705 = vrot.lane.b32.xlu1 %v695_v10, %s1412_s12  ;;  %989 = vrot.lane.b32.xlu0 %v411_v6, %s1413_s13  ;;  %v1269_v10 = vld [vmem:[%s1635_s1 + $0x4] sm:$0x3]  ;;  %p1343_p12 = pnand %p1342_p11, %p1479_p5  ;;  %p1350_p2 = por %p1349_p1, %p1348_p0 }
  0x48   : > { %p1344_p13 = pneg %p1343_p12 }
  0x4a   : > { %991 = vrot.lane.b32.xlu1 %v981_v11, %s1413_s13  ;;  %701 = vrot.lane.b32.xlu0 %v1503_v1, %s1412_s12  ;;  %p1351_p3 = pnand %p1350_p2, %p1344_p13 }
  0x4e   : > { %987 = vrot.lane.b32.xlu1 %v1503_v1, %s1413_s13 }
  0x88   : > { %v417_v12 = vpop.permute.xlu0 %416 }
  0x94   : > { %v323_v13 = vpop.permute.xlu0 %322  ;;  %v319_v14 = vpop.permute.xlu1 %318 }
  0x98   : > { %v234_v15 = vpop.permute.xlu0 %233  ;;  %v230_v16 = vpop.permute.xlu1 %229 }
  0x9c   : > { %v232_v17 = vpop.permute.xlu1 %231  ;;  %v321_v18 = vpop.permute.xlu0 %320 }
  0x9d   : > { %v237_v19 = vsel %vm235_vm0, %v232_v17, %v234_v15  ;;  %v326_v20 = vsel %vm324_vm1, %v321_v18, %v323_v13  ;;  %v236_v21 = vsel %vm235_vm0, %v230_v16, %v232_v17  ;;  %v325_v22 = vsel %vm324_vm1, %v319_v14, %v321_v18 }
  0x9e   : > { %1235 = vmatprep.subr.msk.mxu1 %vm242_vm2, %v237_v19  ;;  %1238 = vmatprep.subr.msk.mxu0 %vm242_vm2, %v326_v20  ;;  %v1082_v16 = vrot.slane %v1269_v10, %v505_v5  ;;  %v1086_v18 = vrot.slane %v1269_v10, %v509_v7 }
  0x9f   : > { %1236 = vmatpush1.msk.msra.mxu1 %vm242_vm2, %v236_v21  ;;  %1239 = vmatpush1.msk.msra.mxu0 %vm242_vm2, %v325_v22 }
  0xa0   : > { %v415_v25 = vpop.permute.xlu1 %414  ;;  %v413_v26 = vpop.permute.xlu0 %412  ;;  %1240 = vmatmul.mubr.msk.f32.vlgmr.msra.gmra.mrb[0].mxu0 %vm238_vm3, %v223_v23  ;;  %1237 = vmatmul.mubr.msk.f32.vlgmr.msra.gmra.mrb[0].mxu1 %vm238_vm3, %v1234_v24 }
  0xa1   : > { %v420_v27 = vsel %vm418_vm4, %v415_v25, %v417_v12  ;;  %v419_v28 = vsel %vm418_vm4, %v413_v26, %v415_v25  ;;  %492 = vmatprep.mubr.f32.mxu0 %v1405_v0  ;;  %1247 = vmatprep.subr.msk.mxu1 %vm242_vm2, %v411_v6  ;;  %v501_v6 = vld [vmem:[%s1635_s1] sm:$0x3] }
  0xa2   : > { %1242 = vmatprep.subr.msk.mxu0 %vm242_vm2, %v420_v27  ;;  %1248 = vmatpush1.msk.msra.mxu1 %vm242_vm2, %v1503_v1  ;;  %v506_v8 = vrot.slane %v501_v6, %v505_v5  ;;  %v510_v9 = vrot.slane %v501_v6, %v509_v7  ;;  %v217_v25 = vld [vmem:[%s210_s8] sm:$0xff] }
  0xa3   : > { %1243 = vmatpush1.msk.msra.mxu0 %vm242_vm2, %v419_v28  ;;  %597 = vmatprep.mubr.f32.mxu1 %v1405_v0 }
  0xa4   : > { %v806_v30 = vpop.permute.xlu1 %805  ;;  %v808_v31 = vpop.permute.xlu0 %807  ;;  %1249 = vmatmul.mubr.msk.f32.vlgmr.msra.gmra.mrb[2].mxu1 %vm238_vm3, %v1246_v29 }
  0xa5   : > { %v811_v32 = vsel %vm809_vm5, %v806_v30, %v808_v31  ;;  %687 = vmatprep.mubr.f32.mxu1 %v1405_v0 }
  0xa6   : > { %1259 = vmatprep.subr.msk.mxu0 %vm242_vm2, %v811_v32 }
  0xa8   : > { %v804_v34 = vpop.permute.xlu1 %803  ;;  %v610_v35 = vpop.permute.xlu0 %609  ;;  %1244 = vmatmul.mubr.msk.f32.vlgmr.msra.gmra.mrb[0].mxu0 %vm238_vm3, %v1241_v33 }
  0xa9   : > { %v810_v36 = vsel %vm809_vm5, %v804_v34, %v806_v30  ;;  %883 = vmatprep.mubr.f32.mxu0 %v1405_v0 }
  0xaa   : > { %1260 = vmatpush1.msk.msra.mxu0 %vm242_vm2, %v810_v36 }
  0xac   : > { %v612_v38 = vpop.permute.xlu1 %611  ;;  %v896_v39 = vpop.permute.xlu0 %895  ;;  %1261 = vmatmul.mubr.msk.f32.vlgmr.msra.gmra.mrb[2].mxu0 %vm238_vm3, %v1258_v37  ;;  %v1414_v37 = vmov 1966171168  }
  0xad   : > { %v615_v40 = vsel %vm613_vm6, %v610_v35, %v612_v38  ;;  %973 = vmatprep.mubr.f32.mxu0 %v1405_v0  ;;  %v1120_v38 = vunpack.c.l.s4 %v1414_v37 }
  0xae   : > { %1250 = vmatprep.subr.msk.mxu1 %vm242_vm2, %v615_v40 }
  0xb0   : > { %v898_v41 = vpop.permute.xlu1 %897  ;;  %v608_v42 = vpop.permute.xlu0 %607 }
  0xb1   : > { %v901_v44 = vsel %vm899_vm7, %v896_v39, %v898_v41  ;;  %v614_v45 = vsel %vm613_vm6, %v608_v42, %v610_v35 }
  0xb2   : > { %1251 = vmatpush1.msk.msra.mxu1 %vm242_vm2, %v614_v45  ;;  %1262 = vmatprep.subr.msk.mxu0 %vm242_vm2, %v901_v44 }
  0xb3   : > { %1252 = vmatmul.mubr.msk.f32.vlgmr.msra.gmra.mrb[2].mxu1 %vm238_vm3, %v1245_v43  ;;  %v1121_v43 = vunpack.c.0.s8 %v1120_v38 }
  0xb4   : > { %v894_v46 = vpop.permute.xlu1 %893  ;;  %v704_v47 = vpop.permute.xlu0 %703  ;;  %781 = vmatprep.mubr.f32.mxu1 %v1405_v0 }
  0xb5   : > { %v900_v49 = vsel %vm899_vm7, %v894_v46, %v896_v39 }
  0xb6   : > { %1263 = vmatpush1.msk.msra.mxu0 %vm242_vm2, %v900_v49 }
  0xb7   : > { %1264 = vmatmul.mubr.msk.f32.vlgmr.msra.gmra.mrb[2].mxu0 %vm238_vm3, %v1257_v48 }
  0xb8   : > { %v706_v50 = vpop.permute.xlu1 %705  ;;  %v990_v51 = vpop.permute.xlu0 %989  ;;  %1067 = vmatprep.mubr.f32.mxu0 %v1405_v0 }
  0xb9   : > { %v709_v52 = vsel %vm707_vm8, %v704_v47, %v706_v50 }
  0xba   : > { %1254 = vmatprep.subr.msk.mxu1 %vm242_vm2, %v709_v52 }
  0xbc   : > { %v992_v53 = vpop.permute.xlu1 %991  ;;  %v702_v54 = vpop.permute.xlu0 %701 }
  0xbd   : > { %v995_v56 = vsel %vm993_vm9, %v990_v51, %v992_v53  ;;  %v708_v57 = vsel %vm707_vm8, %v702_v54, %v704_v47  ;;  %v1124_v47 = vsub.s32 %v1121_v43, %v504_v4 }
  0xbe   : > { %1255 = vmatpush1.msk.msra.mxu1 %vm242_vm2, %v708_v57  ;;  %1266 = vmatprep.subr.msk.mxu0 %vm242_vm2, %v995_v56 }
  0xbf   : > { %1256 = vmatmul.mubr.msk.f32.vlgmr.msra.gmra.mrb[2].mxu1 %vm238_vm3, %v1253_v55 }
  0xc0   : > { %v988_v58 = vpop.permute.xlu1 %987 }
  0xc1   : > { %v994_v60 = vsel %vm993_vm9, %v988_v58, %v990_v51 }
  0xc2   : > { %1267 = vmatpush1.msk.msra.mxu0 %vm242_vm2, %v994_v60 }
  0xc3   : > { %1268 = vmatmul.mubr.msk.f32.vlgmr.msra.gmra.mrb[2].mxu0 %vm238_vm3, %v1265_v59 }
 0x173   : > { %v313_v61 = vpop.f32.mrb[0].mxu1 }
 0x174   : > { %v315_v62 = vpop.f32.mrb[1].mxu1 }
 0x17b   : > { %v494_v63 = vpop.f32.mrb[0].mxu0 }
 0x17c   : > { %v1278_v0 = vadd.f32 %v494_v63, %v313_v61  ;;  %v496_v1 = vpop.f32.mrb[1].mxu0 }
 0x17d   : > { %v1279_v2 = vadd.f32 %v496_v1, %v315_v62 }
 0x17e   : > { %v513_v11 = vmul.f32 %v1278_v0, %v506_v8 }
 0x17f   : > { %v514_v13 = vmul.f32 %v1279_v2, %v510_v9 }
 0x192   : > { %v783_v12 = vpop.f32.mrb[2].mxu1 }
 0x193   : > { %v790_v14 = vadd.f32 %v783_v12, %v513_v11  ;;  %v785_v15 = vpop.f32.mrb[3].mxu1 }
 0x194   : > { %v791_v17 = vadd.f32 %v785_v15, %v514_v13 }
 0x196   : > { %v1069_v19 = vpop.f32.mrb[2].mxu0 }
 0x197   : > { %v1089_v20 = vmul.f32 %v1082_v16, %v1069_v19  ;;  %v1071_v21 = vpop.f32.mrb[3].mxu0 }
 0x198   : > { %v1090_v22 = vmul.f32 %v1086_v18, %v1071_v21 }
 0x199   : > { %v1091_v23 = vadd.f32 %v1089_v20, %v790_v14 }
 0x19a   : > { %v1092_v24 = vadd.f32 %v1090_v22, %v791_v17 }
 0x19c   : > { %v1095_v26 = vcombine.low %v1091_v23, %v1092_v24 }
 0x19e   : > { %v1097_v27 = vsub.f32 %v217_v25, %v1095_v26 }
 0x1a0   : > { %v1098_v28 = vmul.f32 %v1097_v27, %v1097_v27 }
 0x1a2   : > { %v1100_v29 = vcombine.high %v1098_v28, %v1098_v28  ;;  %v1102_v30 = vsel %vm242_vm2, %v1098_v28, 0.0 }
 0x1a3   : > { %v1103_v31 = vrot.slane %v1102_v30, 4 }
 0x1a4   : > { %v1109_v32 = vsel %vm242_vm2, %v1100_v29, 0.0 }
 0x1a5   : > { %v1104_v33 = vadd.f32 %v1103_v31, %v1102_v30  ;;  %v1110_v34 = vrot.slane %v1109_v32, 4 }
 0x1a7   : > { %v1105_v35 = vrot.slane %v1104_v33, 2  ;;  %v1111_v36 = vadd.f32 %v1110_v34, %v1109_v32 }
 0x1a9   : > { %v1106_v39 = vadd.f32 %v1105_v35, %v1104_v33  ;;  %v1112_v40 = vrot.slane %v1111_v36, 2 }
 0x1ab   : > { %v1107_v41 = vrot.slane %v1106_v39, 1  ;;  %v1113_v42 = vadd.f32 %v1112_v40, %v1111_v36 }
 0x1ad   : > { %v1114_v44 = vrot.slane %v1113_v42, 1  ;;  %v1108_v45 = vadd.f32 %v1107_v41, %v1106_v39 }
 0x1af   : > { %v1115_v46 = vadd.f32 %v1114_v44, %v1113_v42 }
 0x1b1   : > { %v1118_v48 = vcombine.low %v1108_v45, %v1115_v46 }
 0x1b3   : > { %v1125_v49 = vrot.slane %v1118_v48, %v1124_v47 }
 0x1b5   : > { %v1132_v50 = vrot.slane %v1125_v49, %v1124_v47 }
 0x1b7   : > { %1138 = vst.msk [vmem:[%s205_s10] sm:$0x3] %vm1136_vm10, %v1132_v50 }
 0x1b8   : > { %1354 = shalt.err (!%p1351_p3)
}
 0x1b9   : > { %s1355_s30 = scalar_lea.hbm %s1592_s14, 32  ;;  %s1359_s7 = scalar_lea.hbm %s1638_s4, 64 }
 0x1ba   : > { %p1356_p4 = scmp.ne.s32.totalorder %s1592_s14, %s1355_s30  ;;  %p1360_p9 = scmp.lt.u32.totalorder %s1592_s14, %s1638_s4 }
 0x1bb   : > { %p1361_p10 = scmp.lt.u32.totalorder %s1359_s7, %s1355_s30  ;;  %p1363_p12 = scmp.lt.u32.totalorder %s1355_s30, %s1592_s14 }
 0x1bc   : > { %p1357_p7 = pnand %p1356_p4, %p1479_p5 }
 0x1bd   : > { %p1362_p11 = por %p1361_p10, %p1360_p9 }
 0x1be   : > { %p1358_p8 = pneg %p1357_p7 }
 0x1bf   : > { %p1364_p13 = por %p1363_p12, %p1362_p11 }
 0x1c1   : > { %p1365_p0 = pnand %p1364_p13, %p1358_p8 }
 0x1c3   : > { %1368 = shalt.err (!%p1365_p0)
}
 0x1c4   : > { %1290 = dma.vmem_to_hbm [thread:$0]  (%p1479_p5), %s1594_s11, 32, %s1592_s14, %s1140_s20  }
 0x1c5 PF: > { %p1296_p1 = scmp.ge.s32.totalorder %s1403_s18, 2  ;;  %s1166_s28 = sand.u32 1, %s1391_s15  }
 0x1c6   : > { %s1167_s9 = scalar_lea.sflag [#allocation4], %s1166_s28 }
 0x1c7   : > { %p1293_p2 = pnand %p1296_p1, %p1483_p6 }
 0x1c9   : > { %1386 = dma.done.wait (!%p1293_p2), %s1167_s9, 32  }
 0x1ca   : > { %1388 = vsyncadd (!%p1293_p2), %s1167_s9, 4294967264  ;;  %p14_p3 = scmp.ge.s32.totalorder %s1466_s21, 4   ;;  %s1641_s15 = smov %s1395_s16 }
 0x1cb   : > { %s1642_s16 = smov %s1399_s17  ;;  %s1643_s17 = smov %s1477_s24 }
 0x1cc   : > { %s1644_s18 = smov %s1466_s21  ;;  %16 = sbr.rel (!%p14_p3) target bundleno = 3 (0x3), region = 83 }
 0x1d3   :  { %1172 = vsyncpa [#allocation4], 1 }
 0x1d4   :  { %1174 = vsyncpa [#allocation4 + $0x1], 1 }

</bundles_post_ra>
